<compile_context>
chip_gen: v7x
topology: tpu7x:2x2x1
jax: 0.10.0
libtpu: 0.0.40
codegen_flags: <defaults>
</compile_context>

<pallas_src>
import math
import functools

import numpy as np
import jax
import jax.numpy as jnp
from jax.experimental import pallas as pl
from jax.experimental.pallas import tpu as pltpu


def _round_up(a, b):
    return ((a + b - 1) // b) * b


def _positional_embedding(d_model, max_len=5000):
    """Matches the PyTorch PositionalEmbedding buffer (sin/cos)."""
    position = np.arange(max_len, dtype=np.float32)[:, None]
    div_term = np.exp(
        np.arange(0, d_model, 2, dtype=np.float32) * -(math.log(10000.0) / d_model)
    )
    pe = np.zeros((max_len, d_model), dtype=np.float32)
    pe[:, 0::2] = np.sin(position * div_term)
    pe[:, 1::2] = np.cos(position * div_term)
    return jnp.asarray(pe)


def _patch_embed_kernel(x_ref, w_ref, pe_ref, o_ref, *,
                        patch_len, stride, num_patches, d_model):
    # x_ref : [block_n, L_pad]              rows already replication-padded
    # w_ref : [patch_len, d_model]          value-embedding weight (pre-transposed)
    # pe_ref: [num_patches, d_model]        positional-embedding rows (f32)
    # o_ref : [block_n, num_patches*d_model] lane-dense 2-D output block
    w = w_ref[...]                                      # resident MXU RHS, loaded once
    for p in range(num_patches):
        start = p * stride
        patch = x_ref[:, start:start + patch_len]       # [block_n, patch_len]
        y = jnp.dot(patch, w, preferred_element_type=jnp.float32)  # [block_n, d_model]
        y = y + pe_ref[p:p + 1, :]                      # f32 add before the output cast
        # lane offset p*d_model is a multiple of 128 -> whole-vreg, unmasked store
        o_ref[:, p * d_model:(p + 1) * d_model] = y.astype(o_ref.dtype)
    # TODO(synk): nn.Dropout(dropout) is identity in eval mode; training-mode
    # dropout (pltpu.prng_random_bits mask) is intentionally not applied here.


def _vmem_budget_bytes():
    """Per-step VMEM budget for the pipelined blocks (double-buffering incl.)."""
    try:
        cap = int(pltpu.get_tpu_info().vmem_capacity_bytes)
    except Exception:
        cap = 64 << 20        # conservative (v7x-sized) fallback
    # keep roughly half of physical VMEM, minus headroom, capped for v5e/v6e
    return int(min(max(cap // 2 - (8 << 20), 8 << 20), 40 << 20))


def _choose_block_n(N, L_pad, num_patches, d_model, in_item, out_item, budget):
    # bytes per row, double-buffered input + output blocks (lane-padded input)
    per_row = 2 * (_round_up(L_pad, 128) * in_item
                   + num_patches * d_model * out_item)
    bn_max = max(8, min(budget // per_row, 512))
    num_blocks = pl.cdiv(N, bn_max)
    if N >= 16:
        # at least 2 grid steps so the "parallel" axis can land on both TCs (v7x)
        num_blocks = max(num_blocks, 2)
    bn = _round_up(pl.cdiv(N, num_blocks), 8)
    return int(bn)


def patch_embedding_forward(x, weight, *, patch_len, stride, padding, d_model,
                            max_len=5000, block_n=None):
    """x: [B, n_vars, L]; weight: [d_model, patch_len] (PyTorch Linear layout).

    Returns (out [B*n_vars, P, d_model], n_vars) matching PatchEmbedding.forward.
    """
    B, n_vars, L = x.shape
    N = B * n_vars
    L_pad = L + padding
    P = (L_pad - patch_len) // stride + 1
    assert weight.shape == (d_model, patch_len)

    # Collapse (B, n_vars) -> N rows (pure view) and do the tiny replication pad
    # once in the wrapper so the kernel reads [block_n, L_pad] directly.
    x2 = x.reshape(N, L)
    if padding > 0:
        x2 = jnp.concatenate(
            [x2, jnp.broadcast_to(x2[:, L - 1:L], (N, padding))], axis=1)

    # One-time tiny reshuffle of the weight so the kernel matmul needs no .T.
    w_t = jnp.asarray(weight).astype(x.dtype).T              # [patch_len, d_model]
    pe = _positional_embedding(d_model, max_len)[:P]          # [P, d_model] f32

    in_item = jnp.dtype(x.dtype).itemsize
    out_item = in_item

    if block_n is None:
        block_n = _choose_block_n(N, L_pad, P, d_model, in_item, out_item,
                                  _vmem_budget_bytes())
    num_blocks = pl.cdiv(N, block_n)
    N_pad = num_blocks * block_n
    if N_pad != N:
        x2 = jnp.concatenate(
            [x2, jnp.zeros((N_pad - N, L_pad), dtype=x2.dtype)], axis=0)

    kernel = functools.partial(
        _patch_embed_kernel, patch_len=patch_len, stride=stride,
        num_patches=P, d_model=d_model)

    # Explicit scoped-VMEM limit sized from the actual (lane-padded) footprint.
    per_step_bytes = (
        2 * block_n * (_round_up(L_pad, 128) * in_item + P * d_model * out_item)
        + 2 * (_round_up(patch_len, 8) * d_model * in_item
               + _round_up(P, 8) * d_model * 4))
    vmem_limit = int(min(max(per_step_bytes + (8 << 20), 32 << 20), 56 << 20))

    flops = 2 * N_pad * P * patch_len * d_model
    bytes_accessed = (N_pad * L_pad * in_item
                      + N_pad * P * d_model * out_item
                      + patch_len * d_model * in_item
                      + P * d_model * 4)

    out2d = pl.pallas_call(
        kernel,
        out_shape=jax.ShapeDtypeStruct((N_pad, P * d_model), x.dtype),
        grid_spec=pltpu.PrefetchScalarGridSpec(
            num_scalar_prefetch=0,
            grid=(num_blocks,),
            in_specs=[
                pl.BlockSpec((block_n, L_pad), lambda i: (i, 0)),
                pl.BlockSpec((patch_len, d_model), lambda i: (0, 0)),
                pl.BlockSpec((P, d_model), lambda i: (0, 0)),
            ],
            out_specs=pl.BlockSpec((block_n, P * d_model), lambda i: (i, 0)),
        ),
        compiler_params=pltpu.CompilerParams(
            dimension_semantics=("parallel",),
            vmem_limit_bytes=vmem_limit,
        ),
        cost_estimate=pl.CostEstimate(
            flops=flops, transcendentals=0, bytes_accessed=bytes_accessed),
    )(x2, w_t, pe)

    # [N_pad, P*d_model] -> [N, P, d_model]: row slice + reshape are free views
    # (identical HBM layout).
    out = out2d[:N].reshape(N, P, d_model)
    return out, n_vars


def _reference(x, weight, *, patch_len, stride, padding, d_model, max_len=5000):
    """Pure-JAX replica of the PyTorch PatchEmbedding forward (eval mode)."""
    B, n_vars, L = x.shape
    if padding > 0:
        xpad = jnp.concatenate(
            [x, jnp.repeat(x[:, :, -1:], padding, axis=-1)], axis=-1)
    else:
        xpad = x
    P = (L + padding - patch_len) // stride + 1
    idx = (jnp.arange(P)[:, None] * stride) + jnp.arange(patch_len)[None, :]
    patches = xpad[:, :, idx]                              # [B, n_vars, P, patch_len]
    patches = patches.reshape(B * n_vars, P, patch_len)
    pe = _positional_embedding(d_model, max_len)[:P]
    out = jnp.einsum('npk,dk->npd', patches,
                     jnp.asarray(weight, jnp.float32)) + pe[None]
    return out.astype(x.dtype)


if __name__ == "__main__":
    key = jax.random.PRNGKey(0)
    B, n_vars, L = 2, 4, 64
    patch_len, stride, padding, d_model = 16, 8, 8, 128

    kx, kw = jax.random.split(key)
    x = jax.random.normal(kx, (B, n_vars, L), dtype=jnp.float32)
    weight = jax.random.normal(kw, (d_model, patch_len), dtype=jnp.float32) \
        * (1.0 / math.sqrt(patch_len))

    out, nv = patch_embedding_forward(
        x, weight, patch_len=patch_len, stride=stride,
        padding=padding, d_model=d_model)
    out = jax.block_until_ready(out)

    P = (L + padding - patch_len) // stride + 1
    ref = _reference(x, weight, patch_len=patch_len, stride=stride,
                     padding=padding, d_model=d_model)

    assert nv == n_vars
    assert out.shape == (B * n_vars, P, d_model), out.shape
    assert jnp.allclose(out, ref, atol=1e-4, rtol=1e-4), "mismatch vs reference"

    print("KERNEL_OK")
</pallas_src>

<mosaic_0001>
module attributes {stable_mosaic.version = 11 : i64} {
  func.func @_patch_embed_kernel(%arg0: i32, %arg1: memref<8x72xf32, #tpu.memory_space<vmem>>, %arg2: memref<16x128xf32, #tpu.memory_space<vmem>>, %arg3: memref<8x128xf32, #tpu.memory_space<vmem>>, %arg4: memref<8x1024xf32, #tpu.memory_space<vmem>>) attributes {dimension_semantics = [#tpu.dimension_semantics<parallel>], iteration_bounds = array<i64: 1>, scalar_prefetch = 0 : i64, scratch_operands = 0 : i64, tpu.core_type = #tpu.core_type<tc>, window_params = [{transform_indices = @transform_0, window_bounds = array<i64: 8, 72>}, {pipeline_mode = #tpu.pipeline_mode<synchronous>, transform_indices = @transform_1, window_bounds = array<i64: 16, 128>}, {pipeline_mode = #tpu.pipeline_mode<synchronous>, transform_indices = @transform_2, window_bounds = array<i64: 8, 128>}, {transform_indices = @transform_3, window_bounds = array<i64: 8, 1024>}]} {
    %c0 = arith.constant 0 : index
    %c0_0 = arith.constant 0 : index
    %0 = vector.load %arg2[%c0, %c0_0] : memref<16x128xf32, #tpu.memory_space<vmem>>, vector<16x128xf32>
    %c0_1 = arith.constant 0 : index
    %c0_2 = arith.constant 0 : index
    %1 = vector.load %arg1[%c0_1, %c0_2] : memref<8x72xf32, #tpu.memory_space<vmem>>, vector<8x16xf32>
    %cst = arith.constant dense<0.000000e+00> : vector<8x128xf32>
    %2 = tpu.matmul %1, %0, %cst {dimension_numbers = #tpu.dot_dimension_numbers<[1], [0], [0], [1], [0, 0, 1, 1], [], []>} : vector<8x16xf32>, vector<16x128xf32>, vector<8x128xf32> -> vector<8x128xf32>
    %c0_3 = arith.constant 0 : index
    %c0_4 = arith.constant 0 : index
    %3 = vector.load %arg3[%c0_3, %c0_4] : memref<8x128xf32, #tpu.memory_space<vmem>>, vector<1x128xf32>
    %4 = vector.broadcast %3 : vector<1x128xf32> to vector<8x128xf32>
    %5 = arith.addf %2, %4 : vector<8x128xf32>
    %c0_5 = arith.constant 0 : index
    %c0_6 = arith.constant 0 : index
    %6 = vector.load %arg4[%c0_5, %c0_6] : memref<8x1024xf32, #tpu.memory_space<vmem>>, vector<8x128xf32>
    tpu.vector_store %arg4[%c0_5, %c0_6], %5 {strides = array<i32>} : memref<8x1024xf32, #tpu.memory_space<vmem>>, vector<8x128xf32>,
    %c0_7 = arith.constant 0 : index
    %c8 = arith.constant 8 : index
    %7 = vector.load %arg1[%c0_7, %c8] : memref<8x72xf32, #tpu.memory_space<vmem>>, vector<8x16xf32>
    %cst_8 = arith.constant dense<0.000000e+00> : vector<8x128xf32>
    %8 = tpu.matmul %7, %0, %cst_8 {dimension_numbers = #tpu.dot_dimension_numbers<[1], [0], [0], [1], [0, 0, 1, 1], [], []>} : vector<8x16xf32>, vector<16x128xf32>, vector<8x128xf32> -> vector<8x128xf32>
    %c1 = arith.constant 1 : index
    %c0_9 = arith.constant 0 : index
    %9 = vector.load %arg3[%c1, %c0_9] : memref<8x128xf32, #tpu.memory_space<vmem>>, vector<1x128xf32>
    %10 = vector.broadcast %9 : vector<1x128xf32> to vector<8x128xf32>
    %11 = arith.addf %8, %10 : vector<8x128xf32>
    %c0_10 = arith.constant 0 : index
    %c128 = arith.constant 128 : index
    %12 = vector.load %arg4[%c0_10, %c128] : memref<8x1024xf32, #tpu.memory_space<vmem>>, vector<8x128xf32>
    tpu.vector_store %arg4[%c0_10, %c128], %11 {strides = array<i32>} : memref<8x1024xf32, #tpu.memory_space<vmem>>, vector<8x128xf32>,
    %c0_11 = arith.constant 0 : index
    %c16 = arith.constant 16 : index
    %13 = vector.load %arg1[%c0_11, %c16] : memref<8x72xf32, #tpu.memory_space<vmem>>, vector<8x16xf32>
    %cst_12 = arith.constant dense<0.000000e+00> : vector<8x128xf32>
    %14 = tpu.matmul %13, %0, %cst_12 {dimension_numbers = #tpu.dot_dimension_numbers<[1], [0], [0], [1], [0, 0, 1, 1], [], []>} : vector<8x16xf32>, vector<16x128xf32>, vector<8x128xf32> -> vector<8x128xf32>
    %c2 = arith.constant 2 : index
    %c0_13 = arith.constant 0 : index
    %15 = vector.load %arg3[%c2, %c0_13] : memref<8x128xf32, #tpu.memory_space<vmem>>, vector<1x128xf32>
    %16 = vector.broadcast %15 : vector<1x128xf32> to vector<8x128xf32>
    %17 = arith.addf %14, %16 : vector<8x128xf32>
    %c0_14 = arith.constant 0 : index
    %c256 = arith.constant 256 : index
    %18 = vector.load %arg4[%c0_14, %c256] : memref<8x1024xf32, #tpu.memory_space<vmem>>, vector<8x128xf32>
    tpu.vector_store %arg4[%c0_14, %c256], %17 {strides = array<i32>} : memref<8x1024xf32, #tpu.memory_space<vmem>>, vector<8x128xf32>,
    %c0_15 = arith.constant 0 : index
    %c24 = arith.constant 24 : index
    %19 = vector.load %arg1[%c0_15, %c24] : memref<8x72xf32, #tpu.memory_space<vmem>>, vector<8x16xf32>
    %cst_16 = arith.constant dense<0.000000e+00> : vector<8x128xf32>
    %20 = tpu.matmul %19, %0, %cst_16 {dimension_numbers = #tpu.dot_dimension_numbers<[1], [0], [0], [1], [0, 0, 1, 1], [], []>} : vector<8x16xf32>, vector<16x128xf32>, vector<8x128xf32> -> vector<8x128xf32>
    %c3 = arith.constant 3 : index
    %c0_17 = arith.constant 0 : index
    %21 = vector.load %arg3[%c3, %c0_17] : memref<8x128xf32, #tpu.memory_space<vmem>>, vector<1x128xf32>
    %22 = vector.broadcast %21 : vector<1x128xf32> to vector<8x128xf32>
    %23 = arith.addf %20, %22 : vector<8x128xf32>
    %c0_18 = arith.constant 0 : index
    %c384 = arith.constant 384 : index
    %24 = vector.load %arg4[%c0_18, %c384] : memref<8x1024xf32, #tpu.memory_space<vmem>>, vector<8x128xf32>
    tpu.vector_store %arg4[%c0_18, %c384], %23 {strides = array<i32>} : memref<8x1024xf32, #tpu.memory_space<vmem>>, vector<8x128xf32>,
    %c0_19 = arith.constant 0 : index
    %c32 = arith.constant 32 : index
    %25 = vector.load %arg1[%c0_19, %c32] : memref<8x72xf32, #tpu.memory_space<vmem>>, vector<8x16xf32>
    %cst_20 = arith.constant dense<0.000000e+00> : vector<8x128xf32>
    %26 = tpu.matmul %25, %0, %cst_20 {dimension_numbers = #tpu.dot_dimension_numbers<[1], [0], [0], [1], [0, 0, 1, 1], [], []>} : vector<8x16xf32>, vector<16x128xf32>, vector<8x128xf32> -> vector<8x128xf32>
    %c4 = arith.constant 4 : index
    %c0_21 = arith.constant 0 : index
    %27 = vector.load %arg3[%c4, %c0_21] : memref<8x128xf32, #tpu.memory_space<vmem>>, vector<1x128xf32>
    %28 = vector.broadcast %27 : vector<1x128xf32> to vector<8x128xf32>
    %29 = arith.addf %26, %28 : vector<8x128xf32>
    %c0_22 = arith.constant 0 : index
    %c512 = arith.constant 512 : index
    %30 = vector.load %arg4[%c0_22, %c512] : memref<8x1024xf32, #tpu.memory_space<vmem>>, vector<8x128xf32>
    tpu.vector_store %arg4[%c0_22, %c512], %29 {strides = array<i32>} : memref<8x1024xf32, #tpu.memory_space<vmem>>, vector<8x128xf32>,
    %c0_23 = arith.constant 0 : index
    %c40 = arith.constant 40 : index
    %31 = vector.load %arg1[%c0_23, %c40] : memref<8x72xf32, #tpu.memory_space<vmem>>, vector<8x16xf32>
    %cst_24 = arith.constant dense<0.000000e+00> : vector<8x128xf32>
    %32 = tpu.matmul %31, %0, %cst_24 {dimension_numbers = #tpu.dot_dimension_numbers<[1], [0], [0], [1], [0, 0, 1, 1], [], []>} : vector<8x16xf32>, vector<16x128xf32>, vector<8x128xf32> -> vector<8x128xf32>
    %c5 = arith.constant 5 : index
    %c0_25 = arith.constant 0 : index
    %33 = vector.load %arg3[%c5, %c0_25] : memref<8x128xf32, #tpu.memory_space<vmem>>, vector<1x128xf32>
    %34 = vector.broadcast %33 : vector<1x128xf32> to vector<8x128xf32>
    %35 = arith.addf %32, %34 : vector<8x128xf32>
    %c0_26 = arith.constant 0 : index
    %c640 = arith.constant 640 : index
    %36 = vector.load %arg4[%c0_26, %c640] : memref<8x1024xf32, #tpu.memory_space<vmem>>, vector<8x128xf32>
    tpu.vector_store %arg4[%c0_26, %c640], %35 {strides = array<i32>} : memref<8x1024xf32, #tpu.memory_space<vmem>>, vector<8x128xf32>,
    %c0_27 = arith.constant 0 : index
    %c48 = arith.constant 48 : index
    %37 = vector.load %arg1[%c0_27, %c48] : memref<8x72xf32, #tpu.memory_space<vmem>>, vector<8x16xf32>
    %cst_28 = arith.constant dense<0.000000e+00> : vector<8x128xf32>
    %38 = tpu.matmul %37, %0, %cst_28 {dimension_numbers = #tpu.dot_dimension_numbers<[1], [0], [0], [1], [0, 0, 1, 1], [], []>} : vector<8x16xf32>, vector<16x128xf32>, vector<8x128xf32> -> vector<8x128xf32>
    %c6 = arith.constant 6 : index
    %c0_29 = arith.constant 0 : index
    %39 = vector.load %arg3[%c6, %c0_29] : memref<8x128xf32, #tpu.memory_space<vmem>>, vector<1x128xf32>
    %40 = vector.broadcast %39 : vector<1x128xf32> to vector<8x128xf32>
    %41 = arith.addf %38, %40 : vector<8x128xf32>
    %c0_30 = arith.constant 0 : index
    %c768 = arith.constant 768 : index
    %42 = vector.load %arg4[%c0_30, %c768] : memref<8x1024xf32, #tpu.memory_space<vmem>>, vector<8x128xf32>
    tpu.vector_store %arg4[%c0_30, %c768], %41 {strides = array<i32>} : memref<8x1024xf32, #tpu.memory_space<vmem>>, vector<8x128xf32>,
    %c0_31 = arith.constant 0 : index
    %c56 = arith.constant 56 : index
    %43 = vector.load %arg1[%c0_31, %c56] : memref<8x72xf32, #tpu.memory_space<vmem>>, vector<8x16xf32>
    %cst_32 = arith.constant dense<0.000000e+00> : vector<8x128xf32>
    %44 = tpu.matmul %43, %0, %cst_32 {dimension_numbers = #tpu.dot_dimension_numbers<[1], [0], [0], [1], [0, 0, 1, 1], [], []>} : vector<8x16xf32>, vector<16x128xf32>, vector<8x128xf32> -> vector<8x128xf32>
    %c7 = arith.constant 7 : index
    %c0_33 = arith.constant 0 : index
    %45 = vector.load %arg3[%c7, %c0_33] : memref<8x128xf32, #tpu.memory_space<vmem>>, vector<1x128xf32>
    %46 = vector.broadcast %45 : vector<1x128xf32> to vector<8x128xf32>
    %47 = arith.addf %44, %46 : vector<8x128xf32>
    %c0_34 = arith.constant 0 : index
    %c896 = arith.constant 896 : index
    %48 = vector.load %arg4[%c0_34, %c896] : memref<8x1024xf32, #tpu.memory_space<vmem>>, vector<8x128xf32>
    tpu.vector_store %arg4[%c0_34, %c896], %47 {strides = array<i32>} : memref<8x1024xf32, #tpu.memory_space<vmem>>, vector<8x128xf32>,
    return
  }
  func.func @transform_0(%arg0: i32) -> (i32, i32) {
    %c0_i32 = arith.constant 0 : i32
    %c0_i32_0 = arith.constant 0 : i32
    return %arg0, %c0_i32 : i32, i32
  }
  func.func @transform_1(%arg0: i32) -> (i32, i32) {
    %c0_i32 = arith.constant 0 : i32
    %c0_i32_0 = arith.constant 0 : i32
    %c0_i32_1 = arith.constant 0 : i32
    return %c0_i32, %c0_i32_0 : i32, i32
  }
  func.func @transform_2(%arg0: i32) -> (i32, i32) {
    %c0_i32 = arith.constant 0 : i32
    %c0_i32_0 = arith.constant 0 : i32
    %c0_i32_1 = arith.constant 0 : i32
    return %c0_i32, %c0_i32_0 : i32, i32
  }
  func.func @transform_3(%arg0: i32) -> (i32, i32) {
    %c0_i32 = arith.constant 0 : i32
    %c0_i32_0 = arith.constant 0 : i32
    return %arg0, %c0_i32 : i32, i32
  }
}

</mosaic_0001>

<bundles_post_ra>
// kernel: tpu_custom_call.1
= control target key start
LH: loop header
LB: loop body
LE: loop exit
PB: predicated region body
PF: predicated region fallthrough
CT: control target
= control target key end

     0   :  { %8 = vsyncpa [#allocation3], 0  ;;  %s1055_s0 = inlined_call_operand.hbm [shape: f32[8,72], index: 0, kind: input, shape index: {}]   ;;  %s1056_s1 = inlined_call_operand.hbm [shape: f32[16,128], index: 1, kind: input, shape index: {}]   ;;  %s1057_s2 = inlined_call_operand.hbm [shape: f32[8,128], index: 2, kind: input, shape index: {}]   ;;  %s1058_s3 = inlined_call_operand.hbm [shape: f32[8,1024], index: 3, kind: output, shape index: {}]  }
   0x1   :  { %9 = vsyncpa [#allocation6], 0 }
   0x2   :  { %10 = vsyncpa [#allocation4], 0  ;;  %s955_s12 = smov [#allocation5]   ;;  %s861_s16 = scalar_lea.hbm %s1056_s1, 256 }
   0x3   :  { %s26_s13 = sshll.u32 %s955_s12, 4  ;;  %p862_p0 = scmp.ne.s32.totalorder %s1056_s1, %s861_s16  ;;  %s27_s13 = int_to_ptr.vmem [resolvable:$true] %s26_s13 }
   0x4   :  { %p865_p1 = scmp.lt.u32.totalorder %s861_s16, %s1056_s1 }
   0x6   :  { %p867_p2 = pnand %p865_p1, %p862_p0 }
   0x8   :  { %870 = shalt.err (!%p867_p2)
}
   0x9   :  { %s871_s21 = scalar_lea.vmem %s27_s13, 256  ;;  %p876_p4 = scmp.lt.s32.totalorder %s27_s13, %s27_s13 }
   0xa   :  { %p872_p3 = scmp.ne.s32.totalorder %s27_s13, %s871_s21  ;;  %p877_p5 = scmp.lt.s32.totalorder %s871_s21, %s871_s21 }
   0xc   :  { %p878_p6 = por %p877_p5, %p876_p4 }
   0xe   :  { %p879_p7 = pnand %p878_p6, %p872_p3 }
  0x10   :  { %882 = shalt.err (!%p879_p7)
}
  0x11   :  { %s956_s22 = smov 128   ;;  %s957_s23 = smov 8  }
  0x12   :  { %32 = dma.hbm_to_vmem [thread:$0]  %s1056_s1, 256, %s27_s13, [#allocation6], %s956_s22, %s956_s22, %s957_s23  }
  0x13   :  { %s958_s26 = smov [#allocation2]   ;;  %s959_s28 = smov [#allocation7]  }
  0x14   :  { %s17_s27 = sshll.u32 %s958_s26, 4  ;;  %s39_s29 = sshll.u32 %s959_s28, 4  ;;  %s18_s27 = int_to_ptr.vmem [resolvable:$true] %s17_s27  ;;  %s40_s29 = int_to_ptr.vmem [resolvable:$true] %s39_s29 }
  0x15   :  { %s883_s5 = scalar_lea.hbm %s1055_s0, 128 }
  0x16   :  { %p884_p8 = scmp.ne.s32.totalorder %s1055_s0, %s883_s5  ;;  %p887_p9 = scmp.lt.u32.totalorder %s883_s5, %s1055_s0 }
  0x18   :  { %p889_p10 = pnand %p887_p9, %p884_p8 }
  0x1a   :  { %892 = shalt.err (!%p889_p10)
}
  0x1b   :  { %s893_s1 = scalar_lea.vmem %s18_s27, 128  ;;  %p898_p12 = scmp.lt.s32.totalorder %s18_s27, %s18_s27 }
  0x1c   :  { %p894_p11 = scmp.ne.s32.totalorder %s18_s27, %s893_s1  ;;  %p899_p13 = scmp.lt.s32.totalorder %s893_s1, %s893_s1 }
  0x1e   :  { %p900_p0 = por %p899_p13, %p898_p12 }
  0x20   :  { %p901_p1 = pnand %p900_p0, %p894_p11 }
  0x22   :  { %904 = shalt.err (!%p901_p1)
}
  0x23   :  { %20 = dma.hbm_to_vmem [thread:$0]  %s1055_s0, 128, %s18_s27, [#allocation3]  }
  0x24   :  { %s905_s14 = scalar_lea.hbm %s1057_s2, 128 }
  0x25   :  { %p906_p2 = scmp.ne.s32.totalorder %s1057_s2, %s905_s14  ;;  %p909_p3 = scmp.lt.u32.totalorder %s905_s14, %s1057_s2 }
  0x27   :  { %p911_p4 = pnand %p909_p3, %p906_p2 }
  0x29   :  { %914 = shalt.err (!%p911_p4)
}
  0x2a   :  { %s915_s19 = scalar_lea.vmem %s40_s29, 128  ;;  %p920_p6 = scmp.lt.s32.totalorder %s40_s29, %s40_s29 }
  0x2b   :  { %p916_p5 = scmp.ne.s32.totalorder %s40_s29, %s915_s19  ;;  %p921_p7 = scmp.lt.s32.totalorder %s915_s19, %s915_s19 }
  0x2d   :  { %p922_p8 = por %p921_p7, %p920_p6 }
  0x2f   :  { %p923_p9 = pnand %p922_p8, %p916_p5 }
  0x31   :  { %926 = shalt.err (!%p923_p9)
}
  0x32   :  { %42 = dma.hbm_to_vmem [thread:$0]  %s1057_s2, 128, %s40_s29, [#allocation6]  }
  0x33   :  { %949 = dma.done.wait [#allocation3], 128  }
  0x34   :  { %950 = vsyncadd [#allocation3], 4294967168 }
  0x35   :  { %951 = dma.done.wait [#allocation6], 384  }
  0x36   :  { %952 = vsyncadd [#allocation6], 4294966912  ;;  %v960_v0 = vmov 0.0|0.0   ;;  %vm961_vm0 = vmmov 0   ;;  %v962_v1 = vmov 0.0   ;;  %v135_v2 = vld [vmem:[#allocation2] sm:$0xff] }
  0x37   :  { %821 = vmatprep.subr.bf16.mxu0 %v960_v0  ;;  %824 = vmatprep.subr.bf16.mxu1 %v960_v0  ;;  %v52_v3 = vld [vmem:[#allocation5] sm:$0xff]  ;;  %v53_v4 = vld [vmem:[#allocation5 + $0x8] sm:$0xff]  ;;  %s963_s21 = smov 120   ;;  %s964_s22 = smov 104   ;;  %vm60_vm1 = vcmask 130048  }
  0x38   :  { %769 = vmatprep.mubr.msk.f32.mxu0 %vm961_vm0, %v962_v1  ;;  %776 = vmatprep.mubr.msk.f32.mxu1 %vm961_vm0, %v962_v1  ;;  %v822_v5 = vpack.c.bf16 %v53_v4, %v52_v3  ;;  %s965_s2 = smov 112   ;;  %s966_s23 = smov 96   ;;  %v725_v13 = vld [vmem:[#allocation7] ss:$0 sm:$0xff]  ;;  %v727_v17 = vld [vmem:[#allocation7 + $0x1] ss:$0 sm:$0xff] }
  0x39   :  { %142 = vrot.lane.b32.xlu0 %v135_v2, %s963_s21  ;;  %306 = vrot.lane.b32.xlu1 %v135_v2, %s964_s22  ;;  %s967_s24 = smov 88   ;;  %s968_s25 = smov 80   ;;  %v729_v21 = vld [vmem:[#allocation7 + $0x2] ss:$0 sm:$0xff]  ;;  %v731_v22 = vld [vmem:[#allocation7 + $0x3] ss:$0 sm:$0xff] }
  0x3a   :  { %823 = vmatpush3.bf16.msra.mxu0 %v822_v5  ;;  %826 = vmatpush3.bf16.msra.mxu1 %v822_v5  ;;  %s969_s26 = smov 72   ;;  %v733_v29 = vld [vmem:[#allocation7 + $0x4] ss:$0 sm:$0xff]  ;;  %v735_v30 = vld [vmem:[#allocation7 + $0x5] ss:$0 sm:$0xff]  ;;  %s970_s27 = smov [#allocation8]  }
  0x3b   :  { %827 = vmatprep.subr.bf16.mxu0 %v960_v0  ;;  %830 = vmatprep.subr.bf16.mxu1 %v960_v0  ;;  %v737_v37 = vld [vmem:[#allocation7 + $0x6] ss:$0 sm:$0xff]  ;;  %v739_v38 = vld [vmem:[#allocation7 + $0x7] ss:$0 sm:$0xff]  ;;  %s715_s28 = sshll.u32 %s970_s27, 4  ;;  %s716_s28 = int_to_ptr.vmem [resolvable:$true] %s715_s28 }
  0x3c   :  { %s927_s29 = scalar_lea.vmem %s716_s28, 1024  ;;  %p932_p11 = scmp.lt.s32.totalorder %s716_s28, %s716_s28 }
  0x3d   :  { %224 = vrot.lane.b32.xlu0 %v135_v2, %s965_s2  ;;  %388 = vrot.lane.b32.xlu1 %v135_v2, %s966_s23  ;;  %p928_p10 = scmp.ne.s32.totalorder %s716_s28, %s927_s29  ;;  %p933_p12 = scmp.lt.s32.totalorder %s927_s29, %s927_s29 }
  0x3e   :  { %770 = vmatmul.mubr.msk.f32.vlgmr.msra.gmra.mrb[0].mxu0 %vm60_vm1, %v135_v2 }
  0x3f   :  { %829 = vmatpush3.bf16.msra.mxu0 %v822_v5  ;;  %783 = vmatprep.mubr.msk.f32.mxu0 %vm961_vm0, %v962_v1  ;;  %p934_p13 = por %p933_p12, %p932_p11 }
  0x40   :  { %833 = vmatprep.subr.bf16.mxu0 %v960_v0 }
  0x41   :  { %470 = vrot.lane.b32.xlu0 %v135_v2, %s967_s24  ;;  %552 = vrot.lane.b32.xlu1 %v135_v2, %s968_s25  ;;  %p935_p0 = pnand %p934_p13, %p928_p10 }
  0x45   :  { %634 = vrot.lane.b32.xlu0 %v135_v2, %s969_s26 }
  0xab   :  { %v143_v6 = vpop.permute.xlu0 %142  ;;  %v307_v7 = vpop.permute.xlu1 %306 }
  0xac   :  { %777 = vmatmul.mubr.msk.f32.vlgmr.msra.gmra.mrb[0].mxu1 %vm60_vm1, %v143_v6 }
  0xad   :  { %832 = vmatpush3.bf16.msra.mxu1 %v822_v5  ;;  %790 = vmatprep.mubr.msk.f32.mxu1 %vm961_vm0, %v962_v1 }
  0xae   :  { %836 = vmatprep.subr.bf16.mxu1 %v960_v0 }
  0xaf   :  { %v225_v8 = vpop.permute.xlu0 %224  ;;  %v389_v9 = vpop.permute.xlu1 %388 }
  0xb0   :  { %784 = vmatmul.mubr.msk.f32.vlgmr.msra.gmra.mrb[2].mxu0 %vm60_vm1, %v225_v8  ;;  %791 = vmatmul.mubr.msk.f32.vlgmr.msra.gmra.mrb[2].mxu1 %vm60_vm1, %v307_v7 }
  0xb1   :  { %835 = vmatpush3.bf16.msra.mxu0 %v822_v5  ;;  %838 = vmatpush3.bf16.msra.mxu1 %v822_v5 }
  0xb2   :  { %797 = vmatprep.mubr.msk.f32.mxu0 %vm961_vm0, %v962_v1  ;;  %804 = vmatprep.mubr.msk.f32.mxu1 %vm961_vm0, %v962_v1 }
  0xb3   :  { %v471_v10 = vpop.permute.xlu0 %470  ;;  %839 = vmatprep.subr.bf16.mxu0 %v960_v0  ;;  %842 = vmatprep.subr.bf16.mxu1 %v960_v0  ;;  %v553_v11 = vpop.permute.xlu1 %552 }
  0xb4   :  { %798 = vmatmul.mubr.msk.f32.vlgmr.msra.gmra.mrb[4].mxu0 %vm60_vm1, %v389_v9  ;;  %805 = vmatmul.mubr.msk.f32.vlgmr.msra.gmra.mrb[4].mxu1 %vm60_vm1, %v471_v10 }
  0xb5   :  { %841 = vmatpush3.bf16.msra.mxu0 %v822_v5  ;;  %844 = vmatpush3.bf16.msra.mxu1 %v822_v5 }
  0xb6   :  { %811 = vmatprep.mubr.msk.f32.mxu0 %vm961_vm0, %v962_v1  ;;  %818 = vmatprep.mubr.msk.f32.mxu1 %vm961_vm0, %v962_v1 }
  0xb7   :  { %v635_v12 = vpop.permute.xlu0 %634 }
  0xb8   :  { %812 = vmatmul.mubr.msk.f32.vlgmr.msra.gmra.mrb[6].mxu0 %vm60_vm1, %v553_v11  ;;  %819 = vmatmul.mubr.msk.f32.vlgmr.msra.gmra.mrb[6].mxu1 %vm60_vm1, %v635_v12 }
 0x111   :  { %v130_v14 = vpop.f32.mrb[0].mxu0 }
 0x112   :  { %v131_v15 = vadd.f32 %v725_v13, %v130_v14  ;;  %v771_v16 = vpop.f32.mrb[1].mxu0 }
 0x114   :  { %134 = vst [vmem:[#allocation8] sm:$0xff] %v131_v15 }
 0x17f   :  { %v212_v18 = vpop.f32.mrb[0].mxu1 }
 0x180   :  { %v213_v19 = vadd.f32 %v727_v17, %v212_v18  ;;  %v778_v20 = vpop.f32.mrb[1].mxu1 }
 0x182   :  { %216 = vst [vmem:[#allocation8 + $0x8] sm:$0xff] %v213_v19 }
 0x183   :  { %v294_v23 = vpop.f32.mrb[2].mxu0  ;;  %v376_v24 = vpop.f32.mrb[2].mxu1 }
 0x184   :  { %v295_v25 = vadd.f32 %v729_v21, %v294_v23  ;;  %v377_v26 = vadd.f32 %v731_v22, %v376_v24  ;;  %v785_v27 = vpop.f32.mrb[3].mxu0  ;;  %v792_v28 = vpop.f32.mrb[3].mxu1 }
 0x186   :  { %298 = vst [vmem:[#allocation8 + $0x10] sm:$0xff] %v295_v25  ;;  %380 = vst [vmem:[#allocation8 + $0x18] sm:$0xff] %v377_v26 }
 0x187   :  { %v458_v31 = vpop.f32.mrb[4].mxu0  ;;  %v540_v32 = vpop.f32.mrb[4].mxu1 }
 0x188   :  { %v459_v33 = vadd.f32 %v733_v29, %v458_v31  ;;  %v541_v34 = vadd.f32 %v735_v30, %v540_v32  ;;  %v799_v35 = vpop.f32.mrb[5].mxu0  ;;  %v806_v36 = vpop.f32.mrb[5].mxu1 }
 0x18a   :  { %462 = vst [vmem:[#allocation8 + $0x20] sm:$0xff] %v459_v33  ;;  %544 = vst [vmem:[#allocation8 + $0x28] sm:$0xff] %v541_v34 }
 0x18b   :  { %v622_v39 = vpop.f32.mrb[6].mxu0  ;;  %v704_v40 = vpop.f32.mrb[6].mxu1 }
 0x18c   :  { %v623_v41 = vadd.f32 %v737_v37, %v622_v39  ;;  %v705_v42 = vadd.f32 %v739_v38, %v704_v40  ;;  %v813_v43 = vpop.f32.mrb[7].mxu0  ;;  %v820_v44 = vpop.f32.mrb[7].mxu1 }
 0x18e   :  { %626 = vst [vmem:[#allocation8 + $0x30] sm:$0xff] %v623_v41  ;;  %708 = vst [vmem:[#allocation8 + $0x38] sm:$0xff] %v705_v42 }
 0x18f   :  { %938 = shalt.err (!%p935_p0)
}
 0x190   :  { %s939_s5 = scalar_lea.hbm %s1058_s3, 1024 }
 0x191   :  { %p940_p1 = scmp.ne.s32.totalorder %s1058_s3, %s939_s5  ;;  %p943_p2 = scmp.lt.u32.totalorder %s939_s5, %s1058_s3 }
 0x193   :  { %p945_p3 = pnand %p943_p2, %p940_p1 }
 0x195   :  { %948 = shalt.err (!%p945_p3)
}
 0x196   :  { %718 = dma.vmem_to_hbm [thread:$0]  %s716_s28, 1024, %s1058_s3, [#allocation4]  }
 0x197   :  { %953 = dma.done.wait [#allocation4], 1024  }
 0x198   :  { %954 = vsyncadd [#allocation4], 4294966272 }
 0x199   :  { %722 = vsyncpa [#allocation3], 1 }
 0x19a   :  { %723 = vsyncpa [#allocation6], 1 }
 0x19b   :  { %724 = vsyncpa [#allocation4], 1 }

</bundles_post_ra>
